<compile_context>
chip_gen: v6e
topology: v6e:2x2x1
jax: 0.10.0
libtpu: 0.0.40
codegen_flags: <defaults>
</compile_context>

<pallas_src>
import functools

import jax
import jax.numpy as jnp
from jax.experimental import pallas as pl
from jax.experimental.pallas import tpu as pltpu


def _self_attention_kernel(x_ref, attn_ref, w_in_ref, b_in_ref,
                           w_out_ref, b_out_ref, o_ref, proj_ref,
                           *, num_heads: int, v_pad: int):
    # x_ref:    (E, S)        bf16   (feature-major, full sequence, batch squeezed)
    # attn_ref: (H, TQ, S)    native dtype (batch squeezed); cast to bf16 per tile below
    # w_in:     (H*Vp, E) bf16   b_in:  (H*Vp, 1) f32
    # w_out:    (E, H*Vp) bf16   b_out: (E, 1)   f32
    # o_ref:    (E, TQ)
    # proj_ref: VMEM scratch (H, Vp, S) bf16 — in_proj output, reused across q tiles.
    q = pl.program_id(1)

    @pl.when(q == 0)
    def _():
        # in_proj over the full sequence, computed once per batch element.
        p = jnp.dot(w_in_ref[...], x_ref[...],
                    preferred_element_type=jnp.float32)            # (H*Vp, S), lane-dense
        p = p + b_in_ref[...]                                      # lane-broadcast bias
        proj_ref[...] = p.reshape(num_heads, v_pad, -1).astype(jnp.bfloat16)

    # Per-tile cast of the dominant stream (VPU work hides under the DMA on a mem-bound kernel).
    attn = attn_ref[...].astype(jnp.bfloat16)                      # (H, TQ, S)
    proj = proj_ref[...]                                           # (H, Vp, S) bf16

    # Per-head attention in transposed layout: ctx_T[h] = value_h^T @ attn[h]^T -> (H, Vp, TQ).
    # Contraction is on the lane (minor) dim of both operands (A @ B^T form); lane dim of the
    # result is TQ (lane-dense).  No head-slice concatenation, no 8-wide MXU outputs.
    ctx = jnp.einsum('hvs,hts->hvt', proj, attn,
                     preferred_element_type=jnp.float32)
    ctx = ctx.reshape(num_heads * v_pad, -1).astype(jnp.bfloat16)  # (H*Vp, TQ)

    # out_proj (ScaledLinear): W_out @ ctx_T + b_out -> (E, TQ)
    out = jnp.dot(w_out_ref[...], ctx, preferred_element_type=jnp.float32)
    out = out + b_out_ref[...]
    o_ref[...] = out.astype(o_ref.dtype)


def _default_vmem_limit_bytes():
    # Cap below physical VMEM (v7x has only 64 MiB/core); keep ~25% headroom.
    try:
        phys = pltpu.get_tpu_info().vmem_capacity_bytes
    except Exception:
        return 48 * 1024 * 1024          # safe on every generation, incl. v7x
    return min((phys * 3) // 4, 100 * 1024 * 1024)


def _pick_tq(seq_len_padded, num_heads, attn_itemsize, vmem_limit):
    """Largest q-tile whose double-buffered attn block fits ~half the VMEM budget."""
    budget = vmem_limit // 2
    denom = 2 * num_heads * seq_len_padded * attn_itemsize
    max_tq = max(budget // max(denom, 1), 8)
    if seq_len_padded <= max_tq:
        return seq_len_padded
    # Prefer lane-aligned multiples of 128 (also keeps the 256-wide MXU output tile happy on
    # v6e when the divisor lands on a multiple of 256); fall back to sublane multiples of 8.
    for step in (128, 8):
        best = 0
        cand = step
        while cand <= max_tq:
            if seq_len_padded % cand == 0:
                best = cand
            cand += step
        if best:
            return best
    return seq_len_padded


def self_attention(x, attn_weights, w_in, b_in, w_out, b_out, *,
                   tq=None, vmem_limit_bytes=None, out_dtype=None):
    """x: (seq, batch, embed); attn_weights: (heads, batch, seq, seq) in its native dtype."""
    seq_len, batch, embed_dim = x.shape
    num_heads = attn_weights.shape[0]
    hv = w_in.shape[0]
    value_head_dim = hv // num_heads
    assert attn_weights.shape == (num_heads, batch, seq_len, seq_len)
    out_dtype = x.dtype if out_dtype is None else out_dtype

    # --- sequence padding (rare path: only when seq_len is not sublane-aligned) ---
    pad = (-seq_len) % 8
    if pad:
        # TODO(synk): this copies the big attn tensor; only taken for awkward seq lengths.
        x = jnp.pad(x, ((0, pad), (0, 0), (0, 0)))
        attn_weights = jnp.pad(attn_weights, ((0, 0), (0, 0), (0, pad), (0, pad)))
    s_pad = seq_len + pad

    # --- value_head_dim padding to a sublane multiple (e.g. zipformer 12 -> 16) ---
    v_pad = ((value_head_dim + 7) // 8) * 8
    if v_pad != value_head_dim:
        w_in = (jnp.zeros((num_heads, v_pad, embed_dim), w_in.dtype)
                .at[:, :value_head_dim, :]
                .set(w_in.reshape(num_heads, value_head_dim, embed_dim))
                .reshape(num_heads * v_pad, embed_dim))
        b_in = (jnp.zeros((num_heads, v_pad), b_in.dtype)
                .at[:, :value_head_dim]
                .set(b_in.reshape(num_heads, value_head_dim))
                .reshape(num_heads * v_pad))
        w_out = (jnp.zeros((embed_dim, num_heads, v_pad), w_out.dtype)
                 .at[:, :, :value_head_dim]
                 .set(w_out.reshape(embed_dim, num_heads, value_head_dim))
                 .reshape(embed_dim, num_heads * v_pad))
    hv_pad = num_heads * v_pad

    # --- per-generation VMEM budget and q-tile size ---
    vmem_limit = _default_vmem_limit_bytes() if vmem_limit_bytes is None else vmem_limit_bytes
    attn_itemsize = jnp.dtype(attn_weights.dtype).itemsize
    if tq is None:
        tq = _pick_tq(s_pad, num_heads, attn_itemsize, vmem_limit)
    if s_pad % tq != 0:
        raise ValueError(f"tq={tq} must divide (padded) seq_len={s_pad}")
    num_q_tiles = s_pad // tq

    # Small layout transposes / casts only; the large attn tensor is passed through untouched.
    x_t = jnp.transpose(x, (1, 2, 0)).astype(jnp.bfloat16)         # (B, E, S)
    w_in_bf = w_in.astype(jnp.bfloat16)
    w_out_bf = w_out.astype(jnp.bfloat16)
    b_in2 = b_in.reshape(hv_pad, 1).astype(jnp.float32)
    b_out2 = b_out.reshape(embed_dim, 1).astype(jnp.float32)

    kernel = functools.partial(_self_attention_kernel,
                               num_heads=num_heads, v_pad=v_pad)

    out_b = pl.pallas_call(
        kernel,
        out_shape=jax.ShapeDtypeStruct((batch, embed_dim, s_pad), out_dtype),
        grid_spec=pltpu.PrefetchScalarGridSpec(
            num_scalar_prefetch=0,
            grid=(batch, num_q_tiles),
            in_specs=[
                pl.BlockSpec((pl.Squeezed(), embed_dim, s_pad),
                             lambda b, q: (b, 0, 0)),
                pl.BlockSpec((num_heads, pl.Squeezed(), tq, s_pad),
                             lambda b, q: (0, b, q, 0)),
                pl.BlockSpec((hv_pad, embed_dim), lambda b, q: (0, 0)),
                pl.BlockSpec((hv_pad, 1), lambda b, q: (0, 0)),
                pl.BlockSpec((embed_dim, hv_pad), lambda b, q: (0, 0)),
                pl.BlockSpec((embed_dim, 1), lambda b, q: (0, 0)),
            ],
            out_specs=pl.BlockSpec((pl.Squeezed(), embed_dim, tq),
                                   lambda b, q: (b, 0, q)),
            scratch_shapes=[
                pltpu.VMEM((num_heads, v_pad, s_pad), jnp.bfloat16),
            ],
        ),
        compiler_params=pltpu.CompilerParams(
            # q-axis carries the in_proj scratch across tiles -> must stay sequential.
            dimension_semantics=("parallel", "arbitrary"),
            vmem_limit_bytes=vmem_limit,
        ),
    )(x_t, attn_weights, w_in_bf, b_in2, w_out_bf, b_out2)

    out = jnp.transpose(out_b, (2, 0, 1))                          # (S_pad, B, E)
    return out[:seq_len] if pad else out


def _reference(x, attn_weights, w_in, b_in, w_out, b_out):
    """Pure-JAX f32 reference mirroring the PyTorch forward."""
    seq_len, batch, embed_dim = x.shape
    num_heads = attn_weights.shape[0]
    hv = w_in.shape[0]
    v = hv // num_heads
    p = x @ w_in.T + b_in                                          # (S, B, H*V)
    p = p.reshape(seq_len, batch, num_heads, v).transpose(2, 1, 0, 3)  # (H, B, S, V)
    c = jnp.matmul(attn_weights, p)                                # (H, B, S, V)
    c = c.transpose(2, 1, 0, 3).reshape(seq_len, batch, hv)
    return c @ w_out.T + b_out


def _run_case(key, *, seq_len, batch, embed_dim, num_heads, value_head_dim, tq=None):
    hv = num_heads * value_head_dim
    kx, ka, k1, k2, k3, k4 = jax.random.split(key, 6)

    x = jax.random.normal(kx, (seq_len, batch, embed_dim), dtype=jnp.float32)
    # attn_weights: softmax over the src (last) axis so rows sum to 1 (native f32).
    logits = jax.random.normal(ka, (num_heads, batch, seq_len, seq_len), dtype=jnp.float32)
    attn_weights = jax.nn.softmax(logits, axis=-1)

    # Deterministic parameter init (synthetic; no checkpoint load).
    # in_proj: Linear(embed_dim -> num_heads * value_head_dim), bias=True
    w_in = jax.random.normal(k1, (hv, embed_dim), dtype=jnp.float32) * (embed_dim ** -0.5)
    b_in = jax.random.normal(k2, (hv,), dtype=jnp.float32) * 0.01
    # out_proj: ScaledLinear(num_heads*value_head_dim -> embed_dim, initial_scale=0.05)
    w_out = jax.random.normal(k3, (embed_dim, hv), dtype=jnp.float32) * (hv ** -0.5) * 0.05
    b_out = jax.random.normal(k4, (embed_dim,), dtype=jnp.float32) * 0.01 * 0.05

    out = self_attention(x, attn_weights, w_in, b_in, w_out, b_out, tq=tq)
    out = jax.block_until_ready(out)

    ref = _reference(x, attn_weights, w_in, b_in, w_out, b_out)
    assert out.shape == x.shape
    # bf16 operands with f32 MXU accumulation -> slightly loosened tolerance.
    assert jnp.allclose(out, ref, atol=1e-2, rtol=1e-2), "mismatch vs reference"


if __name__ == "__main__":
    key = jax.random.PRNGKey(0)
    k_small, k_multi = jax.random.split(key)

    # Tiny single-tile case (tq == seq_len), V already sublane-aligned.
    _run_case(k_small, seq_len=8, batch=2, embed_dim=32,
              num_heads=4, value_head_dim=8)

    # Multi-q-tile case: exercises the per-batch in_proj cache across q tiles and the
    # value_head_dim padding path (V=12 -> Vp=16, as in zipformer).
    _run_case(k_multi, seq_len=256, batch=2, embed_dim=32,
              num_heads=4, value_head_dim=12, tq=128)

    print("KERNEL_OK")
</pallas_src>

<mosaic_0001>
module attributes {stable_mosaic.version = 11 : i64} {
  func.func @_self_attention_kernel(%arg0: i32, %arg1: i32, %arg2: memref<1x32x8xbf16, #tpu.memory_space<vmem>>, %arg3: memref<4x1x8x8xf32, #tpu.memory_space<vmem>>, %arg4: memref<32x32xbf16, #tpu.memory_space<vmem>>, %arg5: memref<32x1xf32, #tpu.memory_space<vmem>>, %arg6: memref<32x32xbf16, #tpu.memory_space<vmem>>, %arg7: memref<32x1xf32, #tpu.memory_space<vmem>>, %arg8: memref<1x32x8xf32, #tpu.memory_space<vmem>>, %arg9: memref<4x8x8xbf16, #tpu.memory_space<vmem>>) attributes {dimension_semantics = [#tpu.dimension_semantics<parallel>, #tpu.dimension_semantics<arbitrary>], iteration_bounds = array<i64: 2, 1>, scalar_prefetch = 0 : i64, scratch_operands = 1 : i64, tpu.core_type = #tpu.core_type<tc>, window_params = [{transform_indices = @transform_0, window_bounds = array<i64: 1, 32, 8>}, {transform_indices = @transform_1, window_bounds = array<i64: 4, 1, 8, 8>}, {pipeline_mode = #tpu.pipeline_mode<synchronous>, transform_indices = @transform_2, window_bounds = array<i64: 32, 32>}, {pipeline_mode = #tpu.pipeline_mode<synchronous>, transform_indices = @transform_3, window_bounds = array<i64: 32, 1>}, {pipeline_mode = #tpu.pipeline_mode<synchronous>, transform_indices = @transform_4, window_bounds = array<i64: 32, 32>}, {pipeline_mode = #tpu.pipeline_mode<synchronous>, transform_indices = @transform_5, window_bounds = array<i64: 32, 1>}, {transform_indices = @transform_6, window_bounds = array<i64: 1, 32, 8>}]} {
    %c0_i32 = arith.constant 0 : i32
    %0 = arith.cmpi eq, %arg1, %c0_i32 : i32
    %1 = arith.extui %0 : i1 to i32
    %c0_i32_0 = arith.constant 0 : i32
    %2 = arith.cmpi ne, %1, %c0_i32_0 : i32
    scf.if %2 {
      %c0_15 = arith.constant 0 : index
      %c0_16 = arith.constant 0 : index
      %18 = vector.load %arg4[%c0_15, %c0_16] : memref<32x32xbf16, #tpu.memory_space<vmem>>, vector<32x32xbf16>
      %c0_17 = arith.constant 0 : index
      %c0_18 = arith.constant 0 : index
      %c0_19 = arith.constant 0 : index
      %19 = vector.load %arg2[%c0_17, %c0_18, %c0_19] : memref<1x32x8xbf16, #tpu.memory_space<vmem>>, vector<1x32x8xbf16>
      %20 = vector.shape_cast %19 : vector<1x32x8xbf16> to vector<32x8xbf16>
      %cst_20 = arith.constant dense<0.000000e+00> : vector<32x8xf32>
      %21 = tpu.matmul %18, %20, %cst_20 {dimension_numbers = #tpu.dot_dimension_numbers<[1], [0], [0], [1], [0, 0, 1, 1], [], []>} : vector<32x32xbf16>, vector<32x8xbf16>, vector<32x8xf32> -> vector<32x8xf32>
      %c0_21 = arith.constant 0 : index
      %c0_22 = arith.constant 0 : index
      %22 = vector.load %arg5[%c0_21, %c0_22] : memref<32x1xf32, #tpu.memory_space<vmem>>, vector<32x1xf32>
      %23 = vector.broadcast %22 : vector<32x1xf32> to vector<32x8xf32>
      %24 = arith.addf %21, %23 : vector<32x8xf32>
      %25 = vector.shape_cast %24 : vector<32x8xf32> to vector<4x8x8xf32>
      %26 = arith.truncf %25 : vector<4x8x8xf32> to vector<4x8x8xbf16>
      %c0_23 = arith.constant 0 : index
      %c0_24 = arith.constant 0 : index
      %c0_25 = arith.constant 0 : index
      %27 = vector.load %arg9[%c0_23, %c0_24, %c0_25] : memref<4x8x8xbf16, #tpu.memory_space<vmem>>, vector<4x8x8xbf16>
      tpu.vector_store %arg9[%c0_23, %c0_24, %c0_25], %26 {strides = array<i32>} : memref<4x8x8xbf16, #tpu.memory_space<vmem>>, vector<4x8x8xbf16>,
    } else {
    }
    %c0 = arith.constant 0 : index
    %c0_1 = arith.constant 0 : index
    %c0_2 = arith.constant 0 : index
    %c0_3 = arith.constant 0 : index
    %3 = vector.load %arg3[%c0, %c0_1, %c0_2, %c0_3] : memref<4x1x8x8xf32, #tpu.memory_space<vmem>>, vector<4x1x8x8xf32>
    %4 = vector.shape_cast %3 : vector<4x1x8x8xf32> to vector<4x8x8xf32>
    %5 = arith.truncf %4 : vector<4x8x8xf32> to vector<4x8x8xbf16>
    %c0_4 = arith.constant 0 : index
    %c0_5 = arith.constant 0 : index
    %c0_6 = arith.constant 0 : index
    %6 = vector.load %arg9[%c0_4, %c0_5, %c0_6] : memref<4x8x8xbf16, #tpu.memory_space<vmem>>, vector<4x8x8xbf16>
    "tpu.trace_start"() <{level = 10 : i32, message = "hvs,hts->hvt"}> : () -> ()
    %cst = arith.constant dense<0.000000e+00> : vector<4x8x8xf32>
    %7 = tpu.matmul %6, %5, %cst {dimension_numbers = #tpu.dot_dimension_numbers<[2], [2], [1], [1], [0, 0, 0, 1, 1, 1], [0], [0]>} : vector<4x8x8xbf16>, vector<4x8x8xbf16>, vector<4x8x8xf32> -> vector<4x8x8xf32>
    "tpu.trace_stop"() : () -> ()
    %8 = vector.shape_cast %7 : vector<4x8x8xf32> to vector<32x8xf32>
    %9 = arith.truncf %8 : vector<32x8xf32> to vector<32x8xbf16>
    %c0_7 = arith.constant 0 : index
    %c0_8 = arith.constant 0 : index
    %10 = vector.load %arg6[%c0_7, %c0_8] : memref<32x32xbf16, #tpu.memory_space<vmem>>, vector<32x32xbf16>
    %cst_9 = arith.constant dense<0.000000e+00> : vector<32x8xf32>
    %11 = tpu.matmul %10, %9, %cst_9 {dimension_numbers = #tpu.dot_dimension_numbers<[1], [0], [0], [1], [0, 0, 1, 1], [], []>} : vector<32x32xbf16>, vector<32x8xbf16>, vector<32x8xf32> -> vector<32x8xf32>
    %c0_10 = arith.constant 0 : index
    %c0_11 = arith.constant 0 : index
    %12 = vector.load %arg7[%c0_10, %c0_11] : memref<32x1xf32, #tpu.memory_space<vmem>>, vector<32x1xf32>
    %13 = vector.broadcast %12 : vector<32x1xf32> to vector<32x8xf32>
    %14 = arith.addf %11, %13 : vector<32x8xf32>
    %c0_12 = arith.constant 0 : index
    %c0_13 = arith.constant 0 : index
    %c0_14 = arith.constant 0 : index
    %15 = vector.load %arg8[%c0_12, %c0_13, %c0_14] : memref<1x32x8xf32, #tpu.memory_space<vmem>>, vector<1x32x8xf32>
    %16 = vector.shape_cast %15 : vector<1x32x8xf32> to vector<32x8xf32>
    %17 = vector.shape_cast %14 : vector<32x8xf32> to vector<1x32x8xf32>
    tpu.vector_store %arg8[%c0_12, %c0_13, %c0_14], %17 {strides = array<i32>} : memref<1x32x8xf32, #tpu.memory_space<vmem>>, vector<1x32x8xf32>,
    return
  }
  func.func @transform_0(%arg0: i32, %arg1: i32) -> (i32, i32, i32) {
    %c0_i32 = arith.constant 0 : i32
    %c0_i32_0 = arith.constant 0 : i32
    %c0_i32_1 = arith.constant 0 : i32
    return %arg0, %c0_i32, %c0_i32_0 : i32, i32, i32
  }
  func.func @transform_1(%arg0: i32, %arg1: i32) -> (i32, i32, i32, i32) {
    %c0_i32 = arith.constant 0 : i32
    %c0_i32_0 = arith.constant 0 : i32
    %c0_i32_1 = arith.constant 0 : i32
    return %c0_i32, %arg0, %arg1, %c0_i32_0 : i32, i32, i32, i32
  }
  func.func @transform_2(%arg0: i32, %arg1: i32) -> (i32, i32) {
    %c0_i32 = arith.constant 0 : i32
    %c0_i32_0 = arith.constant 0 : i32
    %c0_i32_1 = arith.constant 0 : i32
    return %c0_i32, %c0_i32_0 : i32, i32
  }
  func.func @transform_3(%arg0: i32, %arg1: i32) -> (i32, i32) {
    %c0_i32 = arith.constant 0 : i32
    %c0_i32_0 = arith.constant 0 : i32
    %c0_i32_1 = arith.constant 0 : i32
    return %c0_i32, %c0_i32_0 : i32, i32
  }
  func.func @transform_4(%arg0: i32, %arg1: i32) -> (i32, i32) {
    %c0_i32 = arith.constant 0 : i32
    %c0_i32_0 = arith.constant 0 : i32
    %c0_i32_1 = arith.constant 0 : i32
    return %c0_i32, %c0_i32_0 : i32, i32
  }
  func.func @transform_5(%arg0: i32, %arg1: i32) -> (i32, i32) {
    %c0_i32 = arith.constant 0 : i32
    %c0_i32_0 = arith.constant 0 : i32
    %c0_i32_1 = arith.constant 0 : i32
    return %c0_i32, %c0_i32_0 : i32, i32
  }
  func.func @transform_6(%arg0: i32, %arg1: i32) -> (i32, i32, i32) {
    %c0_i32 = arith.constant 0 : i32
    %c0_i32_0 = arith.constant 0 : i32
    return %arg0, %c0_i32, %arg1 : i32, i32, i32
  }
}

</mosaic_0001>

<bundles_post_ra>
// kernel: tpu_custom_call.1
= control target key start
LH: loop header
LB: loop body
LE: loop exit
PB: predicated region body
PF: predicated region fallthrough
CT: control target
= control target key end

     0   :  { %s1074_s21 = smov 0   ;;  %s1076_s22 = smov 0   ;;  %s1213_s0 = inlined_call_operand.vmem [shape: bf16[2,32,8], index: 0, kind: input, shape index: {}]   ;;  %s1214_s1 = inlined_call_operand.vmem [shape: f32[4,2,8,8], index: 1, kind: input, shape index: {}]   ;;  %s1215_s2 = inlined_call_operand.vmem [shape: bf16[32,32], index: 2, kind: input, shape index: {}]   ;;  %s1216_s3 = inlined_call_operand.vmem [shape: f32[32,1], index: 3, kind: input, shape index: {}]   ;;  %s1217_s4 = inlined_call_operand.vmem [shape: bf16[32,32], index: 4, kind: input, shape index: {}]   ;;  %s1218_s5 = inlined_call_operand.vmem [shape: f32[32,1], index: 5, kind: input, shape index: {}]   ;;  %s1219_s6 = inlined_call_operand.vmem [shape: f32[2,32,8], index: 6, kind: output, shape index: {}]  }
   0x1   :  { %s1078_s23 = smov 0   ;;  %s1080_s24 = smov 0  }
   0x2   :  { %s1082_s25 = smov 0  }
   0x3 LB: > { %s28_s26 = sadd.s32 1, %s1030_s24  ;;  %p70_p1 = scmp.ne.s32.totalorder %s1022_s22, %s1018_s21  ;;  %s1034_s25 = sphi %s1082_s25, %s16_s25   ;;  %s1030_s24 = sphi %s1080_s24, %s1223_s24   ;;  %s1026_s23 = sphi %s1078_s23, %s1222_s23   ;;  %s1022_s22 = sphi %s1076_s22, %s1221_s22   ;;  %s1018_s21 = sphi %s1074_s21, %s1220_s21  }
   0x4   : > { %p30_p0 = scmp.ge.s32.totalorder %s28_s26, 2  ;;  %p71_p2 = scmp.eq.s32.totalorder %s1034_s25, 0 }
   0x5   : > { %s63_s28 = sadd.s32 1, %s1022_s22  ;;  %p862_p5 = scmp.ge.s32.totalorder %s1034_s25, 2 }
   0x6   : > { %s1225_s26 = smov (%p30_p0, %s28_s26), 0  ;;  %p72_p3 = por %p71_p2, %p70_p1 }
   0x7   : > { %s58_s27 = ssub.s32 %s1030_s24, %s1225_s26  ;;  %220 = sbr.rel (%p862_p5) target bundleno = 18 (0x12), region = 32 }
   0x8   : > { %p61_p4 = scmp.eq.s32.totalorder %s58_s27, 0 }
   0xa   : > { %s1109_s29 = scalar_select %p61_p4, %s1022_s22, %s63_s28  }
   0xc   : > { %231 = sbr.rel (!%p72_p3) target bundleno = 18 (0x12), region = 40  ;;  %s233_s30 = sand.u32 (%p72_p3), 1, %s1022_s22  }
   0xd   : > { %s864_s7 = sshll.u32 (%p72_p3), %s1030_s24, 3  ;;  %s863_s8 = sshll.u32 (%p72_p3), %s233_s30, 5 }
   0xe   : > { %s238_s11 = scalar_lea.vmem (%p72_p3), %s1214_s1, %s864_s7  ;;  %s235_s12 = scalar_lea.vmem (%p72_p3), [#allocation3], %s863_s8 }
   0xf   : > { %v273_v0 = vld [vmem:[%s238_s11] sm:$0xff] (%p72_p3)  ;;  %v275_v1 = vld [vmem:[%s238_s11 + $0x10] sm:$0xff] (%p72_p3) }
  0x10   : > { %v277_v2 = vld [vmem:[%s238_s11 + $0x20] sm:$0xff] (%p72_p3)  ;;  %274 = vst [vmem:[%s235_s12] sm:$0xff] (%p72_p3), %v273_v0  ;;  %276 = vst [vmem:[%s235_s12 + $0x8] sm:$0xff] (%p72_p3), %v275_v1  ;;  %v279_v3 = vld [vmem:[%s238_s11 + $0x30] sm:$0xff] (%p72_p3) }
  0x11   : > { %278 = vst [vmem:[%s235_s12 + $0x10] sm:$0xff] %v277_v2  ;;  %280 = vst [vmem:[%s235_s12 + $0x18] sm:$0xff] %v279_v3 }
  0x12 PF: > { %p865_p6 = scmp.ge.s32.totalorder %s1034_s25, 1  ;;  %p285_p7 = scmp.lt.s32.totalorder %s1034_s25, 3 }
  0x14   : > { %p286_p8 = pnand %p865_p6, %p285_p7 }
  0x15   : > { %p329_p9 = scmp.lt.s32.totalorder (!%p286_p8), %s1026_s23, 1  ;;  %s292_s20 = sand.u32 (!%p286_p8), 1, %s1018_s21  }
  0x16   : > { %289 = sbr.rel (%p286_p8) target bundleno = 663 (0x297), region = 78  ;;  %s866_s27 = sshll.u32 (!%p286_p8), %s292_s20, 5 }
  0x17   : > { %s1160_s28 = scalar_lea.vmem (!%p286_p8), [#allocation3], %s866_s27 }
  0x1b   : > { %v992_v4 = vld [vmem:[%s1215_s2] sm:$0xff]   ;;  %vm401_vm0 = vcmask 261120   ;;  %s1227_s23 = smov (!%p329_p9, %s1026_s23), 1  ;;  %v357_v6 = vld [vmem:[%s1216_s3 + $0x10] sm:$0xff]  ;;  %v1036_v7 = vmov 0   ;;  %v356_v8 = vld [vmem:[%s1216_s3 + $0x8] sm:$0xff] }
  0x1c   : > { %909 = vmatprep.mubr.msk.bf16.mxu0 %vm401_vm0, %v992_v4  ;;  %v355_v5 = vld [vmem:[%s1216_s3] sm:$0xff]  ;;  %988 = vset.pattern.permute.xlu0 %v1036_v7  ;;  %s887_s19 = sshll.u32 %s1227_s23, 4  ;;  %v358_v9 = vld [vmem:[%s1216_s3 + $0x18] sm:$0xff]  ;;  %v670_v13 = vld [vmem:[%s1218_s5 + $0x8] sm:$0xff]  ;;  %vm478_vm1 = vcmask 64512   ;;  %v1037_v19 = vmov 0.0  }
  0x1d   : > { %989 = vset.pattern.permute.xlu1 %v1036_v7  ;;  %361 = vperm.xlu0 %988, %v355_v5   ;;  %s333_s9 = scalar_lea.vmem %s1213_s0, %s887_s19  ;;  %v669_v12 = vld [vmem:[%s1218_s5] sm:$0xff]  ;;  %v993_v14 = vld [vmem:[%s1215_s2 + $0x8] sm:$0xff]   ;;  %v671_v15 = vld [vmem:[%s1218_s5 + $0x10] sm:$0xff]  ;;  %vm1038_vm2 = vmmov 0   ;;  %vm461_vm3 = vcmask 60416  }
  0x1e   : > { %371 = vperm.xlu1 %989, %v357_v6   ;;  %v990_v10 = vld [vmem:[%s333_s9 + $0x8] sm:$0xff]   ;;  %v991_v11 = vld [vmem:[%s333_s9] sm:$0xff]   ;;  %v672_v16 = vld [vmem:[%s1218_s5 + $0x18] sm:$0xff]  ;;  %913 = vmatprep.subr.bf16.mxu1 %v1037_v19  ;;  %s888_s9 = sshll.u32 %s1227_s23, 5 }
  0x1f   : > { %905 = vmatprep.subr.bf16.mxu0 %v990_v10  ;;  %v466_v17 = vld [vmem:[%s1160_s28] sm:$0xff]  ;;  %v467_v21 = vld [vmem:[%s1160_s28 + $0x8] sm:$0xff]  ;;  %915 = vmatprep.mubr.msk.bf16.mxu1 %vm1038_vm2, %v1037_v19  ;;  %v468_v37 = vld [vmem:[%s1160_s28 + $0x10] sm:$0xff]  ;;  %s341_s12 = scalar_lea.vmem %s1219_s6, %s888_s9 }
  0x20   : > { %906 = vmatpush3.bf16.msra.mxu0 %v990_v10  ;;  %v470_v18 = vpack.c.bf16 %v466_v17, %v466_v17  ;;  %v471_v22 = vpack.c.bf16 %v467_v21, %v467_v21  ;;  %v472_v41 = vpack.c.bf16 %v468_v37, %v468_v37  ;;  %v469_v42 = vld [vmem:[%s1160_s28 + $0x18] sm:$0xff]  ;;  %v994_v50 = vld [vmem:[%s1217_s4] sm:$0xff]  }
  0x21   : > { %366 = vperm.xlu0 %988, %v356_v8   ;;  %907 = vmatprep.subr.bf16.mxu0 %v991_v11  ;;  %v473_v44 = vpack.c.bf16 %v469_v42, %v469_v42  ;;  %v995_v5 = vld [vmem:[%s1217_s4 + $0x8] sm:$0xff]  }
  0x22   : > { %376 = vperm.xlu1 %989, %v358_v9   ;;  %v483_v20 = vsel %vm478_vm1, %v470_v18, 0  ;;  %v529_v23 = vsel %vm478_vm1, %v471_v22, 0  ;;  %v575_v43 = vsel %vm478_vm1, %v472_v41, 0 }
  0x23   : > { %914 = vmatpush3.bf16.xpose.msra.mxu1 %v483_v20  ;;  %v621_v46 = vsel %vm478_vm1, %v473_v44, 0 }
  0x24   : > { %908 = vmatpush3.bf16.msra.mxu0 %v991_v11  ;;  %925 = vmatprep.subr.bf16.mxu1 %v1037_v19 }
  0x25   : > { %675 = vperm.xlu0 %988, %v669_v12   ;;  %919 = vmatprep.subr.bf16.mxu0 %v1037_v19 }
  0x26   : > { %680 = vperm.xlu1 %989, %v670_v13  }
  0x27   : > { %910 = vmatmul.mubr.msk.bf16.vlgmr.msra.gmra.mxu0 %vm401_vm0, %v993_v14 }
  0x28   : > { %920 = vmatpush3.bf16.xpose.msra.mxu0 %v529_v23  ;;  %921 = vmatprep.mubr.msk.bf16.mxu0 %vm1038_vm2, %v1037_v19 }
  0x29   : > { %685 = vperm.xlu0 %988, %v671_v15   ;;  %931 = vmatprep.subr.bf16.mxu0 %v1037_v19 }
  0x2a   : > { %690 = vperm.xlu1 %989, %v672_v16  }
  0x98   : > { %v362_v25 = vpop.permute.xlu0 %361 }
  0x99   : > { %v372_v24 = vpop.permute.xlu1 %371 }
  0x9c   : > { %v367_v35 = vpop.permute.xlu0 %366 }
  0x9d   : > { %v377_v31 = vpop.permute.xlu1 %376 }
  0xa0   : > { %v676_v6 = vpop.permute.xlu0 %675 }
  0xa1   : > { %v681_v7 = vpop.permute.xlu1 %680 }
  0xa4   : > { %v686_v8 = vpop.permute.xlu0 %685 }
  0xa5   : > { %v691_v13 = vpop.permute.xlu1 %690 }
  0xe7   : > { %v911_v26 = vpop.f32.mrf.mxu0 }
  0xe8   : > { %v451_v27 = vadd.f32 %v911_v26, %v372_v24 }
  0xe9   : > { %v442_v28 = vpop.f32.mrf.mxu0 }
  0xea   : > { %v459_v29 = vpack.c.bf16 %v451_v27, %v451_v27  ;;  %v443_v30 = vadd.f32 %v442_v28, %v362_v25 }
  0xeb   : > { %v912_v32 = vpop.f32.mrf.mxu0 }
  0xec   : > { %464 = vst.msk [vmem:[#allocation2 + $0x8] sm:$0xf] %vm461_vm3, %v459_v29  ;;  %v457_v33 = vpack.c.bf16 %v443_v30, %v443_v30  ;;  %v454_v34 = vadd.f32 %v912_v32, %v377_v31 }
  0xed   : > { %v445_v36 = vpop.f32.mrf.mxu0 }
  0xee   : > { %462 = vst.msk [vmem:[#allocation2] sm:$0xf] %vm461_vm3, %v457_v33  ;;  %v460_v38 = vpack.c.bf16 %v454_v34, %v454_v34  ;;  %v446_v39 = vadd.f32 %v445_v36, %v367_v35 }
  0xf0   : > { %465 = vst.msk [vmem:[#allocation2 + $0xc] sm:$0xf] %vm461_vm3, %v460_v38  ;;  %v458_v40 = vpack.c.bf16 %v446_v39, %v446_v39 }
  0xf2   : > { %463 = vst.msk [vmem:[#allocation2 + $0x4] sm:$0xf] %vm461_vm3, %v458_v40 }
  0xf3   : > { %v476_v48 = vld [vmem:[#allocation2 + $0x8] sm:$0xf] }
  0xf5   : > { %v474_v45 = vld [vmem:[#allocation2] sm:$0xf] }
  0xf6   : > { %916 = vmatmul.mubr.msk.bf16.vlgmr.msra.gmra.mxu1 %vm478_vm1, %v474_v45 }
  0xf7   : > { %926 = vmatpush3.bf16.xpose.msra.mxu1 %v575_v43  ;;  %927 = vmatprep.mubr.msk.bf16.mxu1 %vm1038_vm2, %v1037_v19  ;;  %v477_v49 = vld [vmem:[#allocation2 + $0xc] sm:$0xf] }
  0xf9   : > { %v475_v47 = vld [vmem:[#allocation2 + $0x4] sm:$0xf] }
  0xfa   : > { %922 = vmatmul.mubr.msk.bf16.vlgmr.msra.gmra.mxu0 %vm478_vm1, %v475_v47 }
  0xfb   : > { %932 = vmatpush3.bf16.xpose.msra.mxu0 %v621_v46  ;;  %933 = vmatprep.mubr.msk.bf16.mxu0 %vm1038_vm2, %v1037_v19 }
  0xfe   : > { %928 = vmatmul.mubr.msk.bf16.vlgmr.msra.gmra.mxu1 %vm478_vm1, %v476_v48 }
  0xff   : > { %941 = vmatprep.mubr.msk.bf16.mxu1 %vm401_vm0, %v994_v50 }
 0x102   : > { %934 = vmatmul.mubr.msk.bf16.vlgmr.msra.gmra.mxu0 %vm478_vm1, %v477_v49 }
 0x1b6   : > { %v519_v51 = vpop.f32.mrf.mxu1 }
 0x1b8   : > { %v917_v52 = vpop.f32.mrf.mxu1 }
 0x1ba   : > { %v522_v53 = vpop.f32.mrf.mxu1  ;;  %v565_v54 = vpop.f32.mrf.mxu0 }
 0x1bb   : > { %v663_v2 = vpack.c.bf16 %v565_v54, %v519_v51 }
 0x1bc   : > { %v918_v55 = vpop.f32.mrf.mxu1  ;;  %v923_v56 = vpop.f32.mrf.mxu0 }
 0x1be   : > { %v568_v57 = vpop.f32.mrf.mxu0  ;;  %v611_v58 = vpop.f32.mrf.mxu1 }
 0x1c0   : > { %v924_v59 = vpop.f32.mrf.mxu0  ;;  %v929_v60 = vpop.f32.mrf.mxu1 }
 0x1c2   : > { %v614_v61 = vpop.f32.mrf.mxu1  ;;  %v657_v62 = vpop.f32.mrf.mxu0 }
 0x1c3   : > { %v664_v63 = vpack.c.bf16 %v657_v62, %v611_v58 }
 0x1c4   : > { %v930_v0 = vpop.f32.mrf.mxu1  ;;  %v935_v1 = vpop.f32.mrf.mxu0 }
 0x1c5   : > { %937 = vmatprep.subr.bf16.mxu1 %v664_v63 }
 0x1c6   : > { %v660_v3 = vpop.f32.mrf.mxu0  ;;  %938 = vmatpush3.bf16.msra.mxu1 %v664_v63 }
 0x1c7   : > { %939 = vmatprep.subr.bf16.mxu1 %v663_v2 }
 0x1c8   : > { %v936_v4 = vpop.f32.mrf.mxu0 }
 0x1ca   : > { %940 = vmatpush3.bf16.msra.mxu1 %v663_v2 }
 0x1cd   : > { %942 = vmatmul.mubr.msk.bf16.vlgmr.msra.gmra.mxu1 %vm401_vm0, %v995_v5 }
 0x28d   : > { %v943_v9 = vpop.f32.mrf.mxu1 }
 0x28e   : > { %v753_v10 = vadd.f32 %v943_v9, %v686_v8 }
 0x28f   : > { %v744_v11 = vpop.f32.mrf.mxu1 }
 0x290   : > { %761 = vst.msk [vmem:[%s341_s12 + $0x10] sm:$0xff] %vm478_vm1, %v753_v10  ;;  %v745_v12 = vadd.f32 %v744_v11, %v676_v6 }
 0x291   : > { %v944_v14 = vpop.f32.mrf.mxu1 }
 0x292   : > { %759 = vst.msk [vmem:[%s341_s12] sm:$0xff] %vm478_vm1, %v745_v12  ;;  %v756_v15 = vadd.f32 %v944_v14, %v691_v13 }
 0x293   : > { %v747_v16 = vpop.f32.mrf.mxu1 }
 0x294   : > { %762 = vst.msk [vmem:[%s341_s12 + $0x18] sm:$0xff] %vm478_vm1, %v756_v15  ;;  %v748_v17 = vadd.f32 %v747_v16, %v681_v7 }
 0x296   : > { %760 = vst.msk [vmem:[%s341_s12 + $0x8] sm:$0xff] %vm478_vm1, %v748_v17 }
 0x297 PF: > { %s16_s25 = sadd.s32 1, %s1034_s25   ;;  %s1220_s21 = smov %s1022_s22 }
 0x298   : > { %p13_p10 = scmp.ge.s32.totalorder %s16_s25, 4   ;;  %s1221_s22 = smov %s1109_s29 }
 0x299   : > { %s1222_s23 = smov %s1030_s24  ;;  %s1223_s24 = smov %s1225_s26 }
 0x29a   :  { %15 = sbr.rel (!%p13_p10) target bundleno = 3 (0x3), region = 124 }

</bundles_post_ra>
